<compile_context>
chip_gen: v6e
topology: v6e:2x2x1
jax: 0.10.0
libtpu: 0.0.40
codegen_flags: <defaults>
</compile_context>

<pallas_src>
import functools

import jax
import jax.numpy as jnp
from jax.experimental import pallas as pl
from jax.experimental.pallas import tpu as pltpu


def _round_up(x, m):
    return ((x + m - 1) // m) * m


def mlp_kernel(x_ref, w1_ref, b1_ref, w2_ref, b2_ref, o_ref):
    # x arrives in its native f32; bf16 cast happens here (in-VPU, hidden under the
    # MXU) instead of as a separate wrapper-side XLA pass over HBM.
    xb = x_ref[...].astype(w1_ref.dtype)
    h = jnp.dot(xb, w1_ref[...], preferred_element_type=jnp.float32)
    h = jax.nn.sigmoid(h + b1_ref[...])          # f32 sigmoid (EUP); b1 is (1,H), broadcasts
    # Second linear + sigmoid; bf16 only at the dot input, f32 accumulation.
    y = jnp.dot(h.astype(w2_ref.dtype), w2_ref[...],
                preferred_element_type=jnp.float32)
    o_ref[...] = jax.nn.sigmoid(y + b2_ref[...]).astype(o_ref.dtype)


@functools.partial(jax.jit, static_argnames=("fold", "d_out", "batch_tile"))
def _forward_folded(x, w1_f, b1_f, w2_f, b2_f, *, fold, d_out, batch_tile):
    """x: [B, d_in] f32; folded weights precomputed once (see GeneratorDRAGANPallas)."""
    B, d_in = x.shape
    in_f = fold * d_in
    hid_f = w1_f.shape[1]            # fold * hidden
    out_f = fold * d_out
    out_dtype = x.dtype

    # Pad the batch only up to the folded-row alignment (<= 16*fold - 1 rows): keeps the
    # fold reshape legal and the folded second-minor dim a multiple of 16, but never
    # wastes O(batch_tile) rows of DMA / MXU / writeback.
    row_align = 16 * fold
    b_pad = _round_up(B, row_align)
    if b_pad != B:
        x = jnp.pad(x, ((0, b_pad - B), (0, 0)))
    rows_total = b_pad // fold       # folded rows (multiple of 16)

    # Tile size in folded rows: as large as requested, but never larger than the batch,
    # and capped so the grid has >= 2 steps when possible (v7x: shard across 2 TCs).
    tile_rows = max(16, (batch_tile // fold) // 16 * 16)
    tile_rows = min(tile_rows, rows_total)
    if rows_total > 16:
        tile_rows = min(tile_rows, _round_up(pl.cdiv(rows_total, 2), 16))
    grid = (pl.cdiv(rows_total, tile_rows),)     # partial trailing block allowed

    x_f = x.reshape(rows_total, in_f)            # free row-major lane-fold view

    out_folded = pl.pallas_call(
        mlp_kernel,
        out_shape=jax.ShapeDtypeStruct((rows_total, out_f), out_dtype),
        grid_spec=pltpu.PrefetchScalarGridSpec(
            num_scalar_prefetch=0,
            grid=grid,
            in_specs=[
                # x stream: only array whose block index changes per step.
                pl.BlockSpec((tile_rows, in_f), lambda i: (i, 0)),
                pl.BlockSpec((in_f, hid_f), lambda i: (0, 0)),      # W1 resident
                pl.BlockSpec((1, hid_f), lambda i: (0, 0)),         # b1
                pl.BlockSpec((hid_f, out_f), lambda i: (0, 0)),     # W2 resident
                pl.BlockSpec((1, out_f), lambda i: (0, 0)),         # b2
            ],
            out_specs=pl.BlockSpec((tile_rows, out_f), lambda i: (i, 0)),
        ),
        compiler_params=pltpu.CompilerParams(
            dimension_semantics=("parallel",),
        ),
    )(x_f, w1_f, b1_f, w2_f, b2_f)

    # Free row-major un-fold back to [B, d_out]; drop the alignment padding.
    return out_folded.reshape(b_pad, d_out)[:B]


class GeneratorDRAGANPallas:
    """Fused Linear->Sigmoid->Linear->Sigmoid forward (matches GeneratorDRAGAN).

    Folded (block-diagonal) bf16 weights and tiled f32 biases are built ONCE here and
    reused for every forward call, per the perf review (no per-call kron/tile/cast).
    """

    def __init__(self, w1, b1, w2, b2, *, batch_tile=8192, act_dtype=jnp.bfloat16):
        self.d_in, self.hidden = w1.shape
        self.d_out = int(w2.shape[1])
        self.batch_tile = int(batch_tile)
        # Lane-fold factor: pack `fold` batch rows into the lane dim so the kernel's
        # output last-dim becomes fold * d_out (= 128 here).
        self.fold = 128 // self.d_out if (0 < self.d_out < 128 and
                                          128 % self.d_out == 0) else 1
        eye = jnp.eye(self.fold, dtype=jnp.float32)
        self.w1_f = jnp.kron(eye, w1.astype(jnp.float32)).astype(act_dtype)
        self.w2_f = jnp.kron(eye, w2.astype(jnp.float32)).astype(act_dtype)
        self.b1_f = jnp.tile(b1.astype(jnp.float32), self.fold).reshape(1, -1)
        self.b2_f = jnp.tile(b2.astype(jnp.float32), self.fold).reshape(1, -1)

    def __call__(self, x):
        return _forward_folded(x, self.w1_f, self.b1_f, self.w2_f, self.b2_f,
                               fold=self.fold, d_out=self.d_out,
                               batch_tile=self.batch_tile)


def init_params(key, input_size, output_size, hidden_dim, dtype=jnp.float32):
    # Deterministic synthetic init (PyTorch default Linear: U(-1/sqrt(fan_in), +)).
    # Weights stored as [in, out] (transposed vs PyTorch's [out, in]) for the kernel.
    k1, k2, k3, k4 = jax.random.split(key, 4)
    lim1 = 1.0 / jnp.sqrt(jnp.float32(input_size))
    lim2 = 1.0 / jnp.sqrt(jnp.float32(hidden_dim))
    w1 = jax.random.uniform(k1, (input_size, hidden_dim), dtype, -lim1, lim1)
    b1 = jax.random.uniform(k2, (hidden_dim,), dtype, -lim1, lim1)
    w2 = jax.random.uniform(k3, (hidden_dim, output_size), dtype, -lim2, lim2)
    b2 = jax.random.uniform(k4, (output_size,), dtype, -lim2, lim2)
    return w1, b1, w2, b2


if __name__ == "__main__":
    input_size, output_size, hidden_dim = 32, 16, 64
    batch = 200   # deliberately NOT a tile/fold-aligned size: exercises padding path

    key = jax.random.PRNGKey(0)
    kx, kp = jax.random.split(key)
    x = jax.random.normal(kx, (batch, input_size), jnp.float32)
    w1, b1, w2, b2 = init_params(kp, input_size, output_size, hidden_dim)

    model = GeneratorDRAGANPallas(w1, b1, w2, b2)   # folds weights once, reused per call
    out = jax.block_until_ready(model(x))

    # Pure-JAX f32 reference.  Kernel uses bf16 matmul inputs + f32 accumulation,
    # so allow bf16-level tolerance.
    ref = jax.nn.sigmoid(jax.nn.sigmoid(x @ w1 + b1) @ w2 + b2)
    assert out.shape == (batch, output_size)
    err = float(jnp.max(jnp.abs(out - ref)))
    assert jnp.allclose(out, ref, atol=2e-2, rtol=0.0), err

    print("KERNEL_OK")
</pallas_src>

<mosaic_0001>
module attributes {stable_mosaic.version = 11 : i64} {
  func.func @mlp_kernel(%arg0: i32, %arg1: memref<16x256xf32, #tpu.memory_space<vmem>>, %arg2: memref<256x512xbf16, #tpu.memory_space<vmem>>, %arg3: memref<1x512xf32, #tpu.memory_space<vmem>>, %arg4: memref<512x128xbf16, #tpu.memory_space<vmem>>, %arg5: memref<1x128xf32, #tpu.memory_space<vmem>>, %arg6: memref<16x128xf32, #tpu.memory_space<vmem>>) attributes {dimension_semantics = [#tpu.dimension_semantics<parallel>], iteration_bounds = array<i64: 2>, scalar_prefetch = 0 : i64, scratch_operands = 0 : i64, tpu.core_type = #tpu.core_type<tc>, window_params = [{transform_indices = @transform_0, window_bounds = array<i64: 16, 256>}, {pipeline_mode = #tpu.pipeline_mode<synchronous>, transform_indices = @transform_1, window_bounds = array<i64: 256, 512>}, {pipeline_mode = #tpu.pipeline_mode<synchronous>, transform_indices = @transform_2, window_bounds = array<i64: 1, 512>}, {pipeline_mode = #tpu.pipeline_mode<synchronous>, transform_indices = @transform_3, window_bounds = array<i64: 512, 128>}, {pipeline_mode = #tpu.pipeline_mode<synchronous>, transform_indices = @transform_4, window_bounds = array<i64: 1, 128>}, {transform_indices = @transform_5, window_bounds = array<i64: 16, 128>}]} {
    %c0 = arith.constant 0 : index
    %c0_0 = arith.constant 0 : index
    %0 = vector.load %arg1[%c0, %c0_0] : memref<16x256xf32, #tpu.memory_space<vmem>>, vector<16x256xf32>
    %1 = arith.truncf %0 : vector<16x256xf32> to vector<16x256xbf16>
    %c0_1 = arith.constant 0 : index
    %c0_2 = arith.constant 0 : index
    %2 = vector.load %arg2[%c0_1, %c0_2] : memref<256x512xbf16, #tpu.memory_space<vmem>>, vector<256x512xbf16>
    %cst = arith.constant dense<0.000000e+00> : vector<16x512xf32>
    %3 = tpu.matmul %1, %2, %cst {dimension_numbers = #tpu.dot_dimension_numbers<[1], [0], [0], [1], [0, 0, 1, 1], [], []>} : vector<16x256xbf16>, vector<256x512xbf16>, vector<16x512xf32> -> vector<16x512xf32>
    %c0_3 = arith.constant 0 : index
    %c0_4 = arith.constant 0 : index
    %4 = vector.load %arg3[%c0_3, %c0_4] : memref<1x512xf32, #tpu.memory_space<vmem>>, vector<1x512xf32>
    %5 = vector.broadcast %4 : vector<1x512xf32> to vector<16x512xf32>
    %6 = arith.addf %3, %5 : vector<16x512xf32>
    %7 = arith.negf %6 : vector<16x512xf32>
    %8 = math.exp %7 : vector<16x512xf32>
    %cst_5 = arith.constant 1.000000e+00 : f32
    %9 = vector.broadcast %cst_5 : f32 to vector<16x512xf32>
    %10 = arith.addf %9, %8 : vector<16x512xf32>
    %11 = arith.divf %9, %10 : vector<16x512xf32>
    %12 = arith.truncf %11 : vector<16x512xf32> to vector<16x512xbf16>
    %c0_6 = arith.constant 0 : index
    %c0_7 = arith.constant 0 : index
    %13 = vector.load %arg4[%c0_6, %c0_7] : memref<512x128xbf16, #tpu.memory_space<vmem>>, vector<512x128xbf16>
    %cst_8 = arith.constant dense<0.000000e+00> : vector<16x128xf32>
    %14 = tpu.matmul %12, %13, %cst_8 {dimension_numbers = #tpu.dot_dimension_numbers<[1], [0], [0], [1], [0, 0, 1, 1], [], []>} : vector<16x512xbf16>, vector<512x128xbf16>, vector<16x128xf32> -> vector<16x128xf32>
    %c0_9 = arith.constant 0 : index
    %c0_10 = arith.constant 0 : index
    %15 = vector.load %arg5[%c0_9, %c0_10] : memref<1x128xf32, #tpu.memory_space<vmem>>, vector<1x128xf32>
    %16 = vector.broadcast %15 : vector<1x128xf32> to vector<16x128xf32>
    %17 = arith.addf %14, %16 : vector<16x128xf32>
    %18 = arith.negf %17 : vector<16x128xf32>
    %19 = math.exp %18 : vector<16x128xf32>
    %cst_11 = arith.constant 1.000000e+00 : f32
    %20 = vector.broadcast %cst_11 : f32 to vector<16x128xf32>
    %21 = arith.addf %20, %19 : vector<16x128xf32>
    %22 = arith.divf %20, %21 : vector<16x128xf32>
    %c0_12 = arith.constant 0 : index
    %c0_13 = arith.constant 0 : index
    %23 = vector.load %arg6[%c0_12, %c0_13] : memref<16x128xf32, #tpu.memory_space<vmem>>, vector<16x128xf32>
    tpu.vector_store %arg6[%c0_12, %c0_13], %22 {strides = array<i32>} : memref<16x128xf32, #tpu.memory_space<vmem>>, vector<16x128xf32>,
    return
  }
  func.func @transform_0(%arg0: i32) -> (i32, i32) {
    %c0_i32 = arith.constant 0 : i32
    %c0_i32_0 = arith.constant 0 : i32
    return %arg0, %c0_i32 : i32, i32
  }
  func.func @transform_1(%arg0: i32) -> (i32, i32) {
    %c0_i32 = arith.constant 0 : i32
    %c0_i32_0 = arith.constant 0 : i32
    %c0_i32_1 = arith.constant 0 : i32
    return %c0_i32, %c0_i32_0 : i32, i32
  }
  func.func @transform_2(%arg0: i32) -> (i32, i32) {
    %c0_i32 = arith.constant 0 : i32
    %c0_i32_0 = arith.constant 0 : i32
    %c0_i32_1 = arith.constant 0 : i32
    return %c0_i32, %c0_i32_0 : i32, i32
  }
  func.func @transform_3(%arg0: i32) -> (i32, i32) {
    %c0_i32 = arith.constant 0 : i32
    %c0_i32_0 = arith.constant 0 : i32
    %c0_i32_1 = arith.constant 0 : i32
    return %c0_i32, %c0_i32_0 : i32, i32
  }
  func.func @transform_4(%arg0: i32) -> (i32, i32) {
    %c0_i32 = arith.constant 0 : i32
    %c0_i32_0 = arith.constant 0 : i32
    %c0_i32_1 = arith.constant 0 : i32
    return %c0_i32, %c0_i32_0 : i32, i32
  }
  func.func @transform_5(%arg0: i32) -> (i32, i32) {
    %c0_i32 = arith.constant 0 : i32
    %c0_i32_0 = arith.constant 0 : i32
    return %arg0, %c0_i32 : i32, i32
  }
}

</mosaic_0001>

<bundles_post_ra>
// kernel: _forward_folded.1
= control target key start
LH: loop header
LB: loop body
LE: loop exit
PB: predicated region body
PF: predicated region fallthrough
CT: control target
= control target key end

     0   :  { %s1575_s18 = smov 0   ;;  %s1898_s0 = inlined_call_operand.vmem [shape: f32[32,256], index: 0, kind: input, shape index: {}]   ;;  %s1899_s1 = inlined_call_operand.vmem [shape: bf16[256,512], index: 1, kind: input, shape index: {}]   ;;  %s1900_s2 = inlined_call_operand.vmem [shape: f32[1,512], index: 2, kind: input, shape index: {}]   ;;  %s1901_s3 = inlined_call_operand.vmem [shape: bf16[512,128], index: 3, kind: input, shape index: {}]   ;;  %s1902_s4 = inlined_call_operand.vmem [shape: f32[1,128], index: 4, kind: input, shape index: {}]   ;;  %s1903_s5 = inlined_call_operand.vmem [shape: f32[32,128], index: 5, kind: output, shape index: {}]  }
   0x1 LB: > { %s1197_s19 = sadd.s32 4294967295, %s1543_s18   ;;  %p1201_p0 = scmp.ge.s32.totalorder %s1543_s18, 1  ;;  %s1543_s18 = sphi %s1575_s18, %s15_s18  }
   0x2   : > { %p189_p1 = scmp.lt.s32.totalorder %s1543_s18, 3 }
   0x4   : > { %p190_p2 = pnand %p1201_p0, %p189_p1 }
   0x5   : > { %s1202_s9 = sshll.u32 (!%p190_p2), %s1197_s19, 1 }
   0x6   : > { %193 = sbr.rel (%p190_p2) target bundleno = 550 (0x226), region = 40  ;;  %p219_p3 = scmp.lt.s32.totalorder (!%p190_p2), %s1202_s9, 3 }
   0xb   : > { %v1369_v0 = vld [vmem:[%s1899_s1 + $0xe4] ss:$16 sps:$4 sm:$0xff]   ;;  %v1371_v1 = vld [vmem:[%s1899_s1 + $0xec] ss:$16 sps:$4 sm:$0xff]   ;;  %v1373_v2 = vld [vmem:[%s1899_s1 + $0xe0] ss:$16 sps:$4 sm:$0xff]  }
   0xc   : > { %644 = vmatprep.subr.bf16.mxu0 %v1369_v0  ;;  %v1374_v3 = vld [vmem:[%s1899_s1 + $0xe8] ss:$16 sps:$4 sm:$0xff]   ;;  %687 = vmatprep.subr.bf16.mxu1 %v1371_v1  ;;  %v1375_v4 = vld [vmem:[%s1899_s1 + $0xc4] ss:$16 sps:$4 sm:$0xff]   ;;  %v1377_v5 = vld [vmem:[%s1899_s1 + $0xcc] ss:$16 sps:$4 sm:$0xff]  }
   0xd   : > { %645 = vmatpush1.bf16.msra.mxu0 %v1373_v2  ;;  %688 = vmatpush1.bf16.msra.mxu1 %v1374_v3  ;;  %v1379_v6 = vld [vmem:[%s1899_s1 + $0xc0] ss:$16 sps:$4 sm:$0xff]   ;;  %v1380_v7 = vld [vmem:[%s1899_s1 + $0xc8] ss:$16 sps:$4 sm:$0xff]   ;;  %v1381_v8 = vld [vmem:[%s1899_s1 + $0xa4] ss:$16 sps:$4 sm:$0xff]  }
   0xe   : > { %646 = vmatprep.subr.bf16.mxu0 %v1375_v4  ;;  %689 = vmatprep.subr.bf16.mxu1 %v1377_v5  ;;  %v1383_v9 = vld [vmem:[%s1899_s1 + $0xac] ss:$16 sps:$4 sm:$0xff]   ;;  %v1385_v10 = vld [vmem:[%s1899_s1 + $0xa0] ss:$16 sps:$4 sm:$0xff]   ;;  %v1386_v11 = vld [vmem:[%s1899_s1 + $0xa8] ss:$16 sps:$4 sm:$0xff]  }
   0xf   : > { %v1387_v12 = vld [vmem:[%s1899_s1 + $0x84] ss:$16 sps:$4 sm:$0xff]   ;;  %v1389_v13 = vld [vmem:[%s1899_s1 + $0x8c] ss:$16 sps:$4 sm:$0xff]   ;;  %v1391_v14 = vld [vmem:[%s1899_s1 + $0x80] ss:$16 sps:$4 sm:$0xff]  }
  0x10   : > { %v1392_v15 = vld [vmem:[%s1899_s1 + $0x88] ss:$16 sps:$4 sm:$0xff]   ;;  %v1393_v16 = vld [vmem:[%s1899_s1 + $0x64] ss:$16 sps:$4 sm:$0xff]   ;;  %v1395_v17 = vld [vmem:[%s1899_s1 + $0x6c] ss:$16 sps:$4 sm:$0xff]  }
  0x11   : > { %647 = vmatpush1.bf16.msra.mxu0 %v1379_v6  ;;  %690 = vmatpush1.bf16.msra.mxu1 %v1380_v7  ;;  %v1397_v18 = vld [vmem:[%s1899_s1 + $0x60] ss:$16 sps:$4 sm:$0xff]   ;;  %v1398_v19 = vld [vmem:[%s1899_s1 + $0x68] ss:$16 sps:$4 sm:$0xff]   ;;  %v1399_v20 = vld [vmem:[%s1899_s1 + $0x44] ss:$16 sps:$4 sm:$0xff]  }
  0x12   : > { %648 = vmatprep.subr.bf16.mxu0 %v1381_v8  ;;  %691 = vmatprep.subr.bf16.mxu1 %v1383_v9  ;;  %v1401_v21 = vld [vmem:[%s1899_s1 + $0x4c] ss:$16 sps:$4 sm:$0xff]   ;;  %v1403_v22 = vld [vmem:[%s1899_s1 + $0x40] ss:$16 sps:$4 sm:$0xff]   ;;  %v1404_v23 = vld [vmem:[%s1899_s1 + $0x48] ss:$16 sps:$4 sm:$0xff]  }
  0x13   : > { %v1405_v24 = vld [vmem:[%s1899_s1 + $0x24] ss:$16 sps:$4 sm:$0xff]   ;;  %v1407_v25 = vld [vmem:[%s1899_s1 + $0x2c] ss:$16 sps:$4 sm:$0xff]   ;;  %v1409_v26 = vld [vmem:[%s1899_s1 + $0x20] ss:$16 sps:$4 sm:$0xff]  }
  0x14   : > { %v1410_v27 = vld [vmem:[%s1899_s1 + $0x28] ss:$16 sps:$4 sm:$0xff]   ;;  %v1411_v28 = vld [vmem:[%s1899_s1 + $0x4] ss:$16 sps:$4 sm:$0xff]   ;;  %v1413_v29 = vld [vmem:[%s1899_s1 + $0xc] ss:$16 sps:$4 sm:$0xff]  }
  0x15   : > { %649 = vmatpush1.bf16.msra.mxu0 %v1385_v10  ;;  %692 = vmatpush1.bf16.msra.mxu1 %v1386_v11  ;;  %v1415_v30 = vld [vmem:[%s1899_s1] ss:$16 sps:$4 sm:$0xff]   ;;  %v1416_v31 = vld [vmem:[%s1899_s1 + $0x8] ss:$16 sps:$4 sm:$0xff]   ;;  %v1417_v32 = vld [vmem:[%s1899_s1 + $0x1e4] ss:$16 sps:$4 sm:$0xff]  }
  0x16   : > { %650 = vmatprep.subr.bf16.mxu0 %v1387_v12  ;;  %693 = vmatprep.subr.bf16.mxu1 %v1389_v13  ;;  %v1419_v33 = vld [vmem:[%s1899_s1 + $0x1ec] ss:$16 sps:$4 sm:$0xff]   ;;  %v1421_v34 = vld [vmem:[%s1899_s1 + $0x1e0] ss:$16 sps:$4 sm:$0xff]   ;;  %v1422_v35 = vld [vmem:[%s1899_s1 + $0x1e8] ss:$16 sps:$4 sm:$0xff]  }
  0x17   : > { %v1423_v36 = vld [vmem:[%s1899_s1 + $0x1c4] ss:$16 sps:$4 sm:$0xff]   ;;  %s1905_s9 = smov (!%p219_p3, %s1202_s9), 3  ;;  %v1425_v37 = vld [vmem:[%s1899_s1 + $0x1cc] ss:$16 sps:$4 sm:$0xff]  }
  0x18   : > { %v1427_v38 = vld [vmem:[%s1899_s1 + $0x1c0] ss:$16 sps:$4 sm:$0xff]   ;;  %v1428_v39 = vld [vmem:[%s1899_s1 + $0x1c8] ss:$16 sps:$4 sm:$0xff]   ;;  %v1429_v40 = vld [vmem:[%s1899_s1 + $0x1a4] ss:$16 sps:$4 sm:$0xff]  }
  0x19   : > { %651 = vmatpush1.bf16.msra.mxu0 %v1391_v14  ;;  %694 = vmatpush1.bf16.msra.mxu1 %v1392_v15  ;;  %s1316_s8 = sshll.u32 %s1905_s9, 4  ;;  %v1431_v41 = vld [vmem:[%s1899_s1 + $0x1ac] ss:$16 sps:$4 sm:$0xff]   ;;  %v1433_v42 = vld [vmem:[%s1899_s1 + $0x1a0] ss:$16 sps:$4 sm:$0xff]   ;;  %s1206_s13 = sshll.u32 %s1905_s9, 3 }
  0x1a   : > { %652 = vmatprep.subr.bf16.mxu0 %v1393_v16  ;;  %695 = vmatprep.subr.bf16.mxu1 %v1395_v17  ;;  %v1434_v43 = vld [vmem:[%s1899_s1 + $0x1a8] ss:$16 sps:$4 sm:$0xff]   ;;  %s1723_s19 = scalar_lea.vmem %s1898_s0, %s1316_s8  ;;  %v1435_v44 = vld [vmem:[%s1899_s1 + $0x184] ss:$16 sps:$4 sm:$0xff]   ;;  %v1437_v45 = vld [vmem:[%s1899_s1 + $0x18c] ss:$16 sps:$4 sm:$0xff]   ;;  %s229_s16 = scalar_lea.vmem %s1903_s5, %s1206_s13 }
  0x1b   : > { %v1439_v46 = vld [vmem:[%s1899_s1 + $0x180] ss:$16 sps:$4 sm:$0xff]   ;;  %v233_v47 = vld [vmem:[%s1723_s19 + $0x8] sm:$0xff]  ;;  %v1441_v49 = vld [vmem:[%s1899_s1 + $0x164] ss:$16 sps:$4 sm:$0xff]  }
  0x1c   : > { %v1440_v48 = vld [vmem:[%s1899_s1 + $0x188] ss:$16 sps:$4 sm:$0xff]   ;;  %v1443_v51 = vld [vmem:[%s1899_s1 + $0x16c] ss:$16 sps:$4 sm:$0xff]   ;;  %v1445_v53 = vld [vmem:[%s1899_s1 + $0x160] ss:$16 sps:$4 sm:$0xff]  }
  0x1d   : > { %653 = vmatpush1.bf16.msra.mxu0 %v1397_v18  ;;  %696 = vmatpush1.bf16.msra.mxu1 %v1398_v19  ;;  %v235_v50 = vld [vmem:[%s1723_s19 + $0x18] sm:$0xff]  ;;  %v1447_v55 = vld [vmem:[%s1899_s1 + $0x144] ss:$16 sps:$4 sm:$0xff]   ;;  %v1451_v57 = vld [vmem:[%s1899_s1 + $0x140] ss:$16 sps:$4 sm:$0xff]  }
  0x1e   : > { %654 = vmatprep.subr.bf16.mxu0 %v1399_v20  ;;  %697 = vmatprep.subr.bf16.mxu1 %v1401_v21  ;;  %v237_v52 = vpack.c.bf16 %v235_v50, %v233_v47  ;;  %v1446_v54 = vld [vmem:[%s1899_s1 + $0x168] ss:$16 sps:$4 sm:$0xff]   ;;  %v1449_v56 = vld [vmem:[%s1899_s1 + $0x14c] ss:$16 sps:$4 sm:$0xff]   ;;  %v1453_v59 = vld [vmem:[%s1899_s1 + $0x124] ss:$16 sps:$4 sm:$0xff]  }
  0x1f   : > { %v1452_v58 = vld [vmem:[%s1899_s1 + $0x148] ss:$16 sps:$4 sm:$0xff]   ;;  %v1455_v60 = vld [vmem:[%s1899_s1 + $0x12c] ss:$16 sps:$4 sm:$0xff]   ;;  %v1457_v61 = vld [vmem:[%s1899_s1 + $0x120] ss:$16 sps:$4 sm:$0xff]  }
  0x20   : > { %676 = vmatprep.mubr.bf16.mxu0 %v237_v52  ;;  %719 = vmatprep.mubr.bf16.mxu1 %v237_v52  ;;  %v1458_v62 = vld [vmem:[%s1899_s1 + $0x128] ss:$16 sps:$4 sm:$0xff]   ;;  %v1459_v63 = vld [vmem:[%s1899_s1 + $0x104] ss:$16 sps:$4 sm:$0xff]   ;;  %v1461_v0 = vld [vmem:[%s1899_s1 + $0x10c] ss:$16 sps:$4 sm:$0xff]  }
  0x21   : > { %655 = vmatpush1.bf16.msra.mxu0 %v1403_v22  ;;  %698 = vmatpush1.bf16.msra.mxu1 %v1404_v23  ;;  %v1463_v1 = vld [vmem:[%s1899_s1 + $0x100] ss:$16 sps:$4 sm:$0xff]   ;;  %v1464_v2 = vld [vmem:[%s1899_s1 + $0x108] ss:$16 sps:$4 sm:$0xff]  }
  0x22   : > { %656 = vmatprep.subr.bf16.mxu0 %v1405_v24  ;;  %699 = vmatprep.subr.bf16.mxu1 %v1407_v25  ;;  %v232_v3 = vld [vmem:[%s1723_s19] sm:$0xff]  ;;  %v234_v4 = vld [vmem:[%s1723_s19 + $0x10] sm:$0xff]  ;;  %v1465_v6 = vld [vmem:[%s1901_s3 + $0x78] sm:$0xff]  }
  0x23   : > { %v236_v5 = vpack.c.bf16 %v234_v4, %v232_v3  ;;  %v1466_v7 = vld [vmem:[%s1901_s3 + $0xf8] sm:$0xff]   ;;  %v1469_v10 = vld [vmem:[%s1901_s3 + $0x70] sm:$0xff]   ;;  %v1473_v14 = vld [vmem:[%s1901_s3 + $0x68] sm:$0xff]  }
  0x24   : > { %v1467_v8 = vld [vmem:[%s1901_s3 + $0x38] sm:$0xff]   ;;  %v1470_v11 = vld [vmem:[%s1901_s3 + $0xf0] sm:$0xff]   ;;  %v1474_v15 = vld [vmem:[%s1901_s3 + $0xe8] sm:$0xff]  }
  0x25   : > { %657 = vmatpush1.bf16.msra.mxu0 %v1409_v26  ;;  %700 = vmatpush1.bf16.msra.mxu1 %v1410_v27  ;;  %v1468_v9 = vld [vmem:[%s1901_s3 + $0xb8] sm:$0xff]   ;;  %v1471_v12 = vld [vmem:[%s1901_s3 + $0x30] sm:$0xff]   ;;  %v1475_v16 = vld [vmem:[%s1901_s3 + $0x28] sm:$0xff]  }
  0x26   : > { %658 = vmatprep.subr.bf16.mxu0 %v1411_v28  ;;  %701 = vmatprep.subr.bf16.mxu1 %v1413_v29  ;;  %v1472_v13 = vld [vmem:[%s1901_s3 + $0xb0] sm:$0xff]   ;;  %v1476_v17 = vld [vmem:[%s1901_s3 + $0xa8] sm:$0xff]   ;;  %v1477_v18 = vld [vmem:[%s1901_s3 + $0x60] sm:$0xff]  }
  0x27   : > { %v1478_v19 = vld [vmem:[%s1901_s3 + $0xe0] sm:$0xff]   ;;  %v1481_v22 = vld [vmem:[%s1901_s3 + $0x58] sm:$0xff]   ;;  %v1485_v26 = vld [vmem:[%s1901_s3 + $0x50] sm:$0xff]  }
  0x28   : > { %v1479_v20 = vld [vmem:[%s1901_s3 + $0x20] sm:$0xff]   ;;  %v1482_v23 = vld [vmem:[%s1901_s3 + $0xd8] sm:$0xff]   ;;  %v1486_v27 = vld [vmem:[%s1901_s3 + $0xd0] sm:$0xff]  }
  0x29   : > { %659 = vmatpush1.bf16.msra.mxu0 %v1415_v30  ;;  %702 = vmatpush1.bf16.msra.mxu1 %v1416_v31  ;;  %v1480_v21 = vld [vmem:[%s1901_s3 + $0xa0] sm:$0xff]   ;;  %v1483_v24 = vld [vmem:[%s1901_s3 + $0x18] sm:$0xff]   ;;  %v1487_v28 = vld [vmem:[%s1901_s3 + $0x10] sm:$0xff]  }
  0x2a   : > { %660 = vmatprep.subr.bf16.mxu0 %v1417_v32  ;;  %703 = vmatprep.subr.bf16.mxu1 %v1419_v33  ;;  %v1484_v25 = vld [vmem:[%s1901_s3 + $0x98] sm:$0xff]   ;;  %v1488_v29 = vld [vmem:[%s1901_s3 + $0x90] sm:$0xff]   ;;  %v1489_v30 = vld [vmem:[%s1901_s3 + $0x48] sm:$0xff]  }
  0x2b   : > { %v1490_v31 = vld [vmem:[%s1901_s3 + $0xc8] sm:$0xff]  }
  0x2c   : > { %v1491_v32 = vld [vmem:[%s1901_s3 + $0x8] sm:$0xff]  }
  0x2d   : > { %661 = vmatpush2.bf16.msra.mxu0 %v1421_v34  ;;  %704 = vmatpush2.bf16.msra.mxu1 %v1422_v35  ;;  %v1492_v33 = vld [vmem:[%s1901_s3 + $0x88] sm:$0xff]   ;;  %v1493_v34 = vld [vmem:[%s1901_s3 + $0x40] sm:$0xff]  }
  0x2e   : > { %662 = vmatprep.subr.bf16.mxu0 %v1423_v36  ;;  %705 = vmatprep.subr.bf16.mxu1 %v1425_v37  ;;  %v1494_v35 = vld [vmem:[%s1901_s3 + $0xc0] sm:$0xff]  }
  0x2f   : > { %v1495_v36 = vld [vmem:[%s1901_s3] sm:$0xff]  }
  0x30   : > { %v1496_v37 = vld [vmem:[%s1901_s3 + $0x80] sm:$0xff]  }
  0x31   : > { %663 = vmatpush2.bf16.msra.mxu0 %v1427_v38  ;;  %706 = vmatpush2.bf16.msra.mxu1 %v1428_v39  ;;  %v304_v38 = vlaneseq }
  0x32   : > { %664 = vmatprep.subr.bf16.mxu0 %v1429_v40  ;;  %707 = vmatprep.subr.bf16.mxu1 %v1431_v41 }
  0x33   : > { %v305_v39 = vshrl.u32 %v304_v38, 7 }
  0x35   : > { %665 = vmatpush2.bf16.msra.mxu0 %v1433_v42  ;;  %708 = vmatpush2.bf16.msra.mxu1 %v1434_v43  ;;  %v306_v40 = vsub.s32 0, %v305_v39  ;;  %v314_v41 = vsub.s32 2, %v305_v39  ;;  %v302_v42 = vld [vmem:[%s1900_s2] sm:$0xf]  ;;  %v310_v43 = vsub.s32 1, %v305_v39 }
  0x36   : > { %666 = vmatprep.subr.bf16.mxu0 %v1435_v44  ;;  %709 = vmatprep.subr.bf16.mxu1 %v1437_v45  ;;  %v318_v44 = vsub.s32 3, %v305_v39  ;;  %v1279_v39 = vld [vmem:[%s1902_s4] ss:$0 sm:$0xff] }
  0x37   : > { %v307_v45 = vrot.slane %v302_v42, %v306_v40  ;;  %v311_v47 = vrot.slane %v302_v42, %v310_v43 }
  0x39   : > { %667 = vmatpush2.bf16.msra.mxu0 %v1439_v46  ;;  %710 = vmatpush2.bf16.msra.mxu1 %v1440_v48  ;;  %v315_v46 = vrot.slane %v302_v42, %v314_v41  ;;  %v319_v48 = vrot.slane %v302_v42, %v318_v44 }
  0x3a   : > { %668 = vmatprep.subr.bf16.mxu0 %v1441_v49  ;;  %711 = vmatprep.subr.bf16.mxu1 %v1443_v51 }
  0x3d   : > { %669 = vmatpush2.bf16.msra.mxu0 %v1445_v53  ;;  %712 = vmatpush2.bf16.msra.mxu1 %v1446_v54 }
  0x3e   : > { %670 = vmatprep.subr.bf16.mxu0 %v1447_v55  ;;  %713 = vmatprep.subr.bf16.mxu1 %v1449_v56 }
  0x41   : > { %671 = vmatpush2.bf16.msra.mxu0 %v1451_v57  ;;  %714 = vmatpush2.bf16.msra.mxu1 %v1452_v58 }
  0x42   : > { %672 = vmatprep.subr.bf16.mxu0 %v1453_v59  ;;  %715 = vmatprep.subr.bf16.mxu1 %v1455_v60 }
  0x45   : > { %673 = vmatpush2.bf16.msra.mxu0 %v1457_v61  ;;  %716 = vmatpush2.bf16.msra.mxu1 %v1458_v62 }
  0x46   : > { %674 = vmatprep.subr.bf16.mxu0 %v1459_v63  ;;  %717 = vmatprep.subr.bf16.mxu1 %v1461_v0 }
  0x49   : > { %675 = vmatpush2.bf16.msra.mxu0 %v1463_v1  ;;  %718 = vmatpush2.bf16.msra.mxu1 %v1464_v2 }
  0x4a   : > { %1317 = vmatprep.subr.bf16.mxu0 %v1465_v6  ;;  %1339 = vmatprep.subr.bf16.mxu1 %v1466_v7 }
  0x4c   : > { %677 = vmatmul.mubr.bf16.vlgmr.msra.gmra.mxu0 %v236_v5  ;;  %720 = vmatmul.mubr.bf16.vlgmr.msra.gmra.mxu1 %v236_v5 }
  0x4d   : > { %1318 = vmatpush3.bf16.msra.mxu0 %v1467_v8  ;;  %1340 = vmatpush3.bf16.msra.mxu1 %v1468_v9 }
  0x4e   : > { %1319 = vmatprep.subr.bf16.mxu0 %v1469_v10  ;;  %1341 = vmatprep.subr.bf16.mxu1 %v1470_v11 }
  0x51   : > { %1320 = vmatpush3.bf16.msra.mxu0 %v1471_v12  ;;  %1342 = vmatpush3.bf16.msra.mxu1 %v1472_v13 }
  0x52   : > { %1321 = vmatprep.subr.bf16.mxu0 %v1473_v14  ;;  %1343 = vmatprep.subr.bf16.mxu1 %v1474_v15 }
  0x55   : > { %1322 = vmatpush3.bf16.msra.mxu0 %v1475_v16  ;;  %1344 = vmatpush3.bf16.msra.mxu1 %v1476_v17 }
  0x56   : > { %1323 = vmatprep.subr.bf16.mxu0 %v1477_v18  ;;  %1345 = vmatprep.subr.bf16.mxu1 %v1478_v19 }
  0x59   : > { %1324 = vmatpush3.bf16.msra.mxu0 %v1479_v20  ;;  %1346 = vmatpush3.bf16.msra.mxu1 %v1480_v21 }
  0x5a   : > { %1325 = vmatprep.subr.bf16.mxu0 %v1481_v22  ;;  %1347 = vmatprep.subr.bf16.mxu1 %v1482_v23 }
  0x5d   : > { %1326 = vmatpush3.bf16.msra.mxu0 %v1483_v24  ;;  %1348 = vmatpush3.bf16.msra.mxu1 %v1484_v25 }
  0x5e   : > { %1327 = vmatprep.subr.bf16.mxu0 %v1485_v26  ;;  %1349 = vmatprep.subr.bf16.mxu1 %v1486_v27 }
  0x61   : > { %1328 = vmatpush3.bf16.msra.mxu0 %v1487_v28  ;;  %1350 = vmatpush3.bf16.msra.mxu1 %v1488_v29 }
  0x62   : > { %1329 = vmatprep.subr.bf16.mxu0 %v1489_v30  ;;  %1351 = vmatprep.subr.bf16.mxu1 %v1490_v31 }
  0x65   : > { %1330 = vmatpush3.bf16.msra.mxu0 %v1491_v32  ;;  %1352 = vmatpush3.bf16.msra.mxu1 %v1492_v33 }
  0x66   : > { %1331 = vmatprep.subr.bf16.mxu0 %v1493_v34  ;;  %1353 = vmatprep.subr.bf16.mxu1 %v1494_v35 }
  0x69   : > { %1332 = vmatpush3.bf16.msra.mxu0 %v1495_v36  ;;  %1354 = vmatpush3.bf16.msra.mxu1 %v1496_v37 }
 0x10c   : > { %v678_v49 = vpop.f32.mrf.mxu0  ;;  %v721_v50 = vpop.f32.mrf.mxu1 }
 0x10d   : > { %v679_v51 = vadd.f32 %v678_v49, %v307_v45  ;;  %v722_v52 = vadd.f32 %v721_v50, %v315_v46 }
 0x10e   : > { %v680_v53 = vpop.f32.mrf.mxu0  ;;  %v723_v54 = vpop.f32.mrf.mxu1 }
 0x10f   : > { %v1271_v55 = vmul.f32 -1.442695, %v679_v51  ;;  %v1273_v56 = vmul.f32 -1.442695, %v722_v52  ;;  %v681_v57 = vadd.f32 %v680_v53, %v311_v47  ;;  %v724_v58 = vadd.f32 %v723_v54, %v319_v48 }
 0x110   : > { %v682_v59 = vpop.f32.mrf.mxu0  ;;  %v725_v60 = vpop.f32.mrf.mxu1 }
 0x111   : > { %1497 = vpow2.f32 %v1271_v55  ;;  %v1272_v61 = vmul.f32 -1.442695, %v681_v57  ;;  %v1274_v62 = vmul.f32 -1.442695, %v724_v58  ;;  %v683_v63 = vadd.f32 %v682_v59, %v307_v45 }
 0x112   : > { %1499 = vpow2.f32 %v1273_v56  ;;  %v726_v0 = vadd.f32 %v725_v60, %v315_v46  ;;  %v684_v1 = vpop.f32.mrf.mxu0  ;;  %v727_v2 = vpop.f32.mrf.mxu1 }
 0x113   : > { %1501 = vpow2.f32 %v1272_v61  ;;  %v1275_v3 = vmul.f32 -1.442695, %v683_v63  ;;  %v685_v4 = vadd.f32 %v684_v1, %v311_v47  ;;  %v728_v5 = vadd.f32 %v727_v2, %v319_v48 }
 0x114   : > { %1503 = vpow2.f32 %v1274_v62  ;;  %v1277_v6 = vmul.f32 -1.442695, %v726_v0 }
 0x115   : > { %1505 = vpow2.f32 %v1275_v3  ;;  %v1276_v7 = vmul.f32 -1.442695, %v685_v4  ;;  %v1278_v8 = vmul.f32 -1.442695, %v728_v5 }
 0x116   : > { %1507 = vpow2.f32 %v1277_v6 }
 0x117   : > { %1509 = vpow2.f32 %v1276_v7 }
 0x118   : > { %1511 = vpow2.f32 %v1278_v8 }
 0x11e   : > { %v1498_v9 = vpop.eup %1497 }
 0x11f   : > { %v1500_v10 = vpop.eup %1499  ;;  %v754_v11 = vadd.f32 1.0, %v1498_v9 }
 0x120   : > { %v1502_v12 = vpop.eup %1501  ;;  %v756_v22 = vadd.f32 1.0, %v1500_v10 }
 0x121   : > { %v1504_v13 = vpop.eup %1503  ;;  %v755_v14 = vadd.f32 1.0, %v1502_v12  ;;  %1513 = vrcp.f32 %v754_v11 }
 0x122   : > { %v1506_v15 = vpop.eup %1505  ;;  %v757_v16 = vadd.f32 1.0, %v1504_v13 }
 0x123   : > { %v1508_v17 = vpop.eup %1507  ;;  %1515 = vrcp.f32 %v755_v14  ;;  %v758_v18 = vadd.f32 1.0, %v1506_v15 }
 0x124   : > { %v1510_v19 = vpop.eup %1509  ;;  %1517 = vrcp.f32 %v757_v16  ;;  %v760_v20 = vadd.f32 1.0, %v1508_v17 }
 0x125   : > { %v1512_v21 = vpop.eup %1511  ;;  %1519 = vrcp.f32 %v758_v18  ;;  %v759_v23 = vadd.f32 1.0, %v1510_v19 }
 0x126   : > { %1521 = vrcp.f32 %v760_v20  ;;  %v761_v24 = vadd.f32 1.0, %v1512_v21 }
 0x127   : > { %1523 = vrcp.f32 %v759_v23 }
 0x128   : > { %1525 = vrcp.f32 %v761_v24 }
 0x129   : > { %1527 = vrcp.f32 %v756_v22 }
 0x12e   : > { %v1514_v25 = vpop.eup %1513 }
 0x130   : > { %v1516_v26 = vpop.eup %1515 }
 0x131   : > { %v1518_v27 = vpop.eup %1517 }
 0x132   : > { %v1520_v28 = vpop.eup %1519 }
 0x133   : > { %v1522_v29 = vpop.eup %1521  ;;  %v778_v35 = vpack.c.bf16 %v1520_v28, %v1514_v25 }
 0x134   : > { %v1524_v30 = vpop.eup %1523 }
 0x135   : > { %v1526_v31 = vpop.eup %1525  ;;  %v779_v32 = vpack.c.bf16 %v1524_v30, %v1516_v26 }
 0x136   : > { %v1528_v33 = vpop.eup %1527  ;;  %v781_v34 = vpack.c.bf16 %v1526_v31, %v1518_v27 }
 0x137   : > { %1077 = vmatprep.mubr.bf16.mxu0 %v779_v32  ;;  %v780_v36 = vpack.c.bf16 %v1522_v29, %v1528_v33 }
 0x138   : > { %1118 = vmatprep.mubr.bf16.mxu1 %v781_v34  ;;  %1078 = vmatmul.mubr.bf16.vlgmr.msra.gmra.mxu0 %v778_v35 }
 0x139   : > { %1119 = vmatmul.mubr.bf16.vlgmr.msra.gmra.mxu1 %v780_v36 }
 0x1f8   : > { %v1333_v37 = vpop.f32.mrf.mxu0 }
 0x1f9   : > { %v1355_v38 = vpop.f32.mrf.mxu1 }
 0x1fa   : > { %v1334_v40 = vpop.f32.mrf.mxu0 }
 0x1fb   : > { %v1335_v41 = vadd.f32 %v1334_v40, %v1333_v37  ;;  %v1356_v42 = vpop.f32.mrf.mxu1 }
 0x1fc   : > { %v1336_v43 = vpop.f32.mrf.mxu0  ;;  %v1357_v45 = vadd.f32 %v1356_v42, %v1355_v38 }
 0x1fd   : > { %v1080_v44 = vadd.f32 %v1335_v41, %v1279_v39  ;;  %v1358_v46 = vpop.f32.mrf.mxu1 }
 0x1fe   : > { %v1337_v47 = vpop.f32.mrf.mxu0 }
 0x1ff   : > { %v1121_v48 = vadd.f32 %v1357_v45, %v1080_v44  ;;  %v1338_v49 = vadd.f32 %v1337_v47, %v1336_v43  ;;  %v1359_v50 = vpop.f32.mrf.mxu1 }
 0x200   : > { %v1360_v53 = vadd.f32 %v1359_v50, %v1358_v46 }
 0x201   : > { %v1312_v51 = vmul.f32 -1.442695, %v1121_v48  ;;  %v1083_v52 = vadd.f32 %v1338_v49, %v1279_v39 }
 0x203   : > { %1529 = vpow2.f32 %v1312_v51  ;;  %v1124_v54 = vadd.f32 %v1360_v53, %v1083_v52 }
 0x205   : > { %v1313_v55 = vmul.f32 -1.442695, %v1124_v54 }
 0x207   : > { %1531 = vpow2.f32 %v1313_v55 }
 0x210   : > { %v1530_v56 = vpop.eup %1529 }
 0x211   : > { %v1133_v57 = vadd.f32 1.0, %v1530_v56 }
 0x213   : > { %1533 = vrcp.f32 %v1133_v57 }
 0x214   : > { %v1532_v58 = vpop.eup %1531 }
 0x215   : > { %v1134_v59 = vadd.f32 1.0, %v1532_v58 }
 0x217   : > { %1535 = vrcp.f32 %v1134_v59 }
 0x220   : > { %v1534_v60 = vpop.eup %1533 }
 0x221   : > { %1139 = vst [vmem:[%s229_s16] sm:$0xff] %v1534_v60 }
 0x224   : > { %v1536_v61 = vpop.eup %1535 }
 0x225   : > { %1140 = vst [vmem:[%s229_s16 + $0x8] sm:$0xff] %v1536_v61 }
 0x226 PF: > { %s15_s18 = sadd.s32 1, %s1543_s18  }
 0x227   : > { %p12_p4 = scmp.ge.s32.totalorder %s15_s18, 4  }
 0x229   :  { %14 = sbr.rel (!%p12_p4) target bundleno = 1 (0x1), region = 70 }

</bundles_post_ra>
